<compile_context>
chip_gen: v6e
topology: v6e:2x2x1
jax: 0.10.0
libtpu: 0.0.40
codegen_flags: <defaults>
</compile_context>

<pallas_src>
import functools
import math

import jax
import jax.numpy as jnp
from jax.experimental import pallas as pl
from jax.experimental.pallas import tpu as pltpu

LANES = 128
TM_MAX = 8192          # 8192 * 128 * 4 B = 4 MiB f32 per input block
ACC_ROWS_MAX = 32      # up to 4 vregs of accumulator -> 4 independent add chains
VMEM_LIMIT_BYTES = 48 * 1024 * 1024


def _round_up(x, m):
    return ((x + m - 1) // m) * m


def _sublane_multiple(dtype):
    bits = jnp.dtype(dtype).itemsize * 8
    if bits >= 32:
        return 8
    if bits == 16:
        return 16
    return 32


def _num_grid_parallel_cores():
    # Among the targeted generations only v7x exposes 2 TensorCores to a single
    # Pallas program; v5e/v6e are single-TC, where a size-2 outer axis would
    # only add a wasted ghost-block re-DMA for small inputs.
    try:
        kind = jax.devices()[0].device_kind.lower()
    except Exception:
        return 1
    if "v7" in kind or "7x" in kind:
        return 2
    return 1


def _l1_kernel(o_ref, t_ref, out_ref, acc_ref, *, grid_inner, n_row_blocks,
               tail_rows, tm, acc_rows):
    c = pl.program_id(0)   # "parallel" core-split axis
    i = pl.program_id(1)   # "arbitrary" streaming-reduction axis

    # Zero the per-core vector accumulator at the start of this core's range.
    @pl.when(i == 0)
    def _():
        acc_ref[...] = jnp.zeros_like(acc_ref)

    logical_blk = c * grid_inner + i
    n_full_blocks = n_row_blocks - 1 if tail_rows else n_row_blocks

    def _block_diff():
        return jnp.abs(o_ref[...].astype(jnp.float32)
                       - t_ref[...].astype(jnp.float32))

    def _accumulate(diff):
        # Chunked partial reduction: (tm,128) -> (tm//acc_rows, acc_rows, 128)
        # -> (acc_rows, 128).  The leading-dim split is at multiples of 8
        # sublanes, so it stays on (8,128) tile boundaries (no relayout).
        acc_ref[...] += diff.reshape(tm // acc_rows, acc_rows, LANES).sum(axis=0)

    # Fast path: all full blocks, no masking work at all.
    @pl.when(logical_blk < n_full_blocks)
    def _():
        _accumulate(_block_diff())

    # Slow path: only the single ragged last block pays iota/compare/select,
    # which also zeroes any stale VMEM rows of the clipped DMA.
    if tail_rows:
        @pl.when(logical_blk == n_row_blocks - 1)
        def _():
            diff = _block_diff()
            row_ids = jax.lax.broadcasted_iota(jnp.int32, (tm, LANES), 0)
            diff = jnp.where(row_ids < tail_rows, diff, 0.0)
            _accumulate(diff)

    # Ghost blocks (logical_blk >= n_row_blocks) match neither branch; their
    # DMA index is clamped to a real block in the index_map, so no OOB reads.

    # One cross-lane/sublane reduce per core, only at the end of its range.
    @pl.when(i == grid_inner - 1)
    def _():
        out_ref[0, 0] = jnp.sum(acc_ref[...])


def l1_loss(output, target):
    assert output.shape == target.shape, "output/target shapes must match"
    n = output.size

    flat_o = output.reshape(-1)
    flat_t = target.reshape(-1)

    n_main = (n // LANES) * LANES
    rem = n - n_main

    # Sub-128-element lane tail handled with plain jnp (cheaper than padding
    # / re-materializing the whole inputs).
    tail_sum = jnp.float32(0.0)
    if rem > 0:
        tail_sum = jnp.sum(
            jnp.abs(flat_o[n_main:].astype(jnp.float32)
                    - flat_t[n_main:].astype(jnp.float32)))

    if n_main == 0:
        total = tail_sum
    else:
        rows = n_main // LANES
        sub = max(_sublane_multiple(output.dtype), _sublane_multiple(target.dtype))
        tm = min(TM_MAX, _round_up(rows, sub))
        acc_rows = math.gcd(tm, ACC_ROWS_MAX)   # always divides tm, >= 8
        n_row_blocks = pl.cdiv(rows, tm)
        tail_rows = rows % tm

        n_outer = max(1, min(_num_grid_parallel_cores(), n_row_blocks))
        grid_inner = pl.cdiv(n_row_blocks, n_outer)

        o2d = (flat_o[:n_main] if rem > 0 else flat_o).reshape(rows, LANES)
        t2d = (flat_t[:n_main] if rem > 0 else flat_t).reshape(rows, LANES)

        def in_map(c, i):
            # Clamp ghost blocks to the last real block (their contribution is
            # skipped inside the kernel) so every DMA stays in bounds.
            blk = jnp.minimum(c * grid_inner + i, n_row_blocks - 1)
            return (blk, 0)

        kernel = functools.partial(
            _l1_kernel, grid_inner=grid_inner, n_row_blocks=n_row_blocks,
            tail_rows=tail_rows, tm=tm, acc_rows=acc_rows)

        partials = pl.pallas_call(
            kernel,
            out_shape=jax.ShapeDtypeStruct((n_outer, 1), jnp.float32),
            grid_spec=pltpu.PrefetchScalarGridSpec(
                num_scalar_prefetch=0,
                grid=(n_outer, grid_inner),
                in_specs=[
                    pl.BlockSpec((tm, LANES), in_map),
                    pl.BlockSpec((tm, LANES), in_map),
                ],
                out_specs=pl.BlockSpec((1, 1), lambda c, i: (c, 0),
                                       memory_space=pltpu.SMEM),
                scratch_shapes=[pltpu.VMEM((acc_rows, LANES), jnp.float32)],
            ),
            compiler_params=pltpu.CompilerParams(
                dimension_semantics=("parallel", "arbitrary"),
                vmem_limit_bytes=VMEM_LIMIT_BYTES,
            ),
        )(o2d, t2d)

        total = jnp.sum(partials) + tail_sum

    mean = total / jnp.float32(n)
    return mean.astype(output.dtype)


if __name__ == "__main__":
    key = jax.random.PRNGKey(0)
    k_out, k_tgt = jax.random.split(key)

    # Main check: small NCHW-like dense-prediction shapes (n % 128 == 0 path).
    output = jax.random.normal(k_out, (2, 4, 16, 16), dtype=jnp.float32)
    target = jax.random.normal(k_tgt, (2, 4, 16, 16), dtype=jnp.float32)
    loss = l1_loss(output, target)
    jax.block_until_ready(loss)
    ref = jnp.mean(jnp.abs(output - target))
    assert jnp.allclose(loss, ref, rtol=1e-5, atol=1e-6), (loss, ref)

    # Secondary check: ragged rows + sub-128 lane tail (435 = 3*128 + 51).
    k2o, k2t = jax.random.split(jax.random.PRNGKey(1))
    out2 = jax.random.normal(k2o, (3, 5, 29), dtype=jnp.float32)
    tgt2 = jax.random.normal(k2t, (3, 5, 29), dtype=jnp.float32)
    loss2 = l1_loss(out2, tgt2)
    jax.block_until_ready(loss2)
    ref2 = jnp.mean(jnp.abs(out2 - tgt2))
    assert jnp.allclose(loss2, ref2, rtol=1e-5, atol=1e-6), (loss2, ref2)

    print("KERNEL_OK")
</pallas_src>

<mosaic_0001>
module attributes {stable_mosaic.version = 11 : i64} {
  func.func @_l1_kernel(%arg0: i32, %arg1: i32, %arg2: memref<16x128xf32, #tpu.memory_space<vmem>>, %arg3: memref<16x128xf32, #tpu.memory_space<vmem>>, %arg4: memref<1x1xf32, #tpu.memory_space<smem>>, %arg5: memref<16x128xf32, #tpu.memory_space<vmem>>) attributes {dimension_semantics = [#tpu.dimension_semantics<parallel>, #tpu.dimension_semantics<arbitrary>], iteration_bounds = array<i64: 1, 1>, scalar_prefetch = 0 : i64, scratch_operands = 1 : i64, tpu.core_type = #tpu.core_type<tc>, window_params = [{transform_indices = @transform_0, window_bounds = array<i64: 16, 128>}, {transform_indices = @transform_1, window_bounds = array<i64: 16, 128>}, {transform_indices = @transform_2, window_bounds = array<i64: 1, 1>}]} {
    %c0_i32 = arith.constant 0 : i32
    %0 = arith.cmpi eq, %arg1, %c0_i32 : i32
    %1 = arith.extui %0 : i1 to i32
    %c0_i32_0 = arith.constant 0 : i32
    %2 = arith.cmpi ne, %1, %c0_i32_0 : i32
    scf.if %2 {
      %cst = arith.constant 0.000000e+00 : f32
      %11 = vector.broadcast %cst : f32 to vector<16x128xf32>
      %c0 = arith.constant 0 : index
      %c0_5 = arith.constant 0 : index
      %12 = vector.load %arg5[%c0, %c0_5] : memref<16x128xf32, #tpu.memory_space<vmem>>, vector<16x128xf32>
      tpu.vector_store %arg5[%c0, %c0_5], %11 {strides = array<i32>} : memref<16x128xf32, #tpu.memory_space<vmem>>, vector<16x128xf32>,
    } else {
    }
    %c1_i32 = arith.constant 1 : i32
    %3 = arith.muli %arg0, %c1_i32 : i32
    %4 = arith.addi %3, %arg1 : i32
    %c1_i32_1 = arith.constant 1 : i32
    %5 = arith.cmpi slt, %4, %c1_i32_1 : i32
    %6 = arith.extui %5 : i1 to i32
    %c0_i32_2 = arith.constant 0 : i32
    %7 = arith.cmpi ne, %6, %c0_i32_2 : i32
    scf.if %7 {
      %c0 = arith.constant 0 : index
      %c0_5 = arith.constant 0 : index
      %11 = vector.load %arg2[%c0, %c0_5] : memref<16x128xf32, #tpu.memory_space<vmem>>, vector<16x128xf32>
      %c0_6 = arith.constant 0 : index
      %c0_7 = arith.constant 0 : index
      %12 = vector.load %arg3[%c0_6, %c0_7] : memref<16x128xf32, #tpu.memory_space<vmem>>, vector<16x128xf32>
      %13 = arith.subf %11, %12 : vector<16x128xf32>
      %14 = math.absf %13 : vector<16x128xf32>
      %c0_8 = arith.constant 0 : index
      %c0_9 = arith.constant 0 : index
      %15 = vector.load %arg5[%c0_8, %c0_9] : memref<16x128xf32, #tpu.memory_space<vmem>>, vector<16x128xf32>
      %16 = vector.shape_cast %14 : vector<16x128xf32> to vector<1x16x128xf32>
      %cst = arith.constant dense<0.000000e+00> : vector<16x128xf32>
      %17 = vector.multi_reduction <add>, %16, %cst [0] : vector<1x16x128xf32> to vector<16x128xf32>
      %18 = arith.addf %15, %17 : vector<16x128xf32>
      %c0_10 = arith.constant 0 : index
      %c0_11 = arith.constant 0 : index
      %19 = vector.load %arg5[%c0_10, %c0_11] : memref<16x128xf32, #tpu.memory_space<vmem>>, vector<16x128xf32>
      tpu.vector_store %arg5[%c0_10, %c0_11], %18 {strides = array<i32>} : memref<16x128xf32, #tpu.memory_space<vmem>>, vector<16x128xf32>,
    } else {
    }
    %c0_i32_3 = arith.constant 0 : i32
    %8 = arith.cmpi eq, %arg1, %c0_i32_3 : i32
    %9 = arith.extui %8 : i1 to i32
    %c0_i32_4 = arith.constant 0 : i32
    %10 = arith.cmpi ne, %9, %c0_i32_4 : i32
    scf.if %10 {
      %c0 = arith.constant 0 : index
      %c0_5 = arith.constant 0 : index
      %11 = vector.load %arg5[%c0, %c0_5] : memref<16x128xf32, #tpu.memory_space<vmem>>, vector<16x128xf32>
      %12 = vector.shape_cast %11 : vector<16x128xf32> to vector<1x16x128xf32>
      %cst = arith.constant dense<0.000000e+00> : vector<1xf32>
      %13 = vector.multi_reduction <add>, %12, %cst [1, 2] : vector<1x16x128xf32> to vector<1xf32>
      %14 = vector.shape_cast %13 : vector<1xf32> to vector<1x1x1xf32>
      %15 = vector.extract %14[0, 0, 0] : f32 from vector<1x1x1xf32>
      %c0_6 = arith.constant 0 : index
      %c0_7 = arith.constant 0 : index
      %16 = memref.load %arg4[%c0_6, %c0_7] : memref<1x1xf32, #tpu.memory_space<smem>>
      memref.store %15, %arg4[%c0_6, %c0_7] : memref<1x1xf32, #tpu.memory_space<smem>>
    } else {
    }
    return
  }
  func.func @transform_0(%arg0: i32, %arg1: i32) -> (i32, i32) {
    %c1_i32 = arith.constant 1 : i32
    %0 = arith.muli %arg0, %c1_i32 : i32
    %1 = arith.addi %0, %arg1 : i32
    %c0_i32 = arith.constant 0 : i32
    %2 = arith.minsi %1, %c0_i32 : i32
    %c0_i32_0 = arith.constant 0 : i32
    %c0_i32_1 = arith.constant 0 : i32
    return %2, %c0_i32_0 : i32, i32
  }
  func.func @transform_1(%arg0: i32, %arg1: i32) -> (i32, i32) {
    %c1_i32 = arith.constant 1 : i32
    %0 = arith.muli %arg0, %c1_i32 : i32
    %1 = arith.addi %0, %arg1 : i32
    %c0_i32 = arith.constant 0 : i32
    %2 = arith.minsi %1, %c0_i32 : i32
    %c0_i32_0 = arith.constant 0 : i32
    %c0_i32_1 = arith.constant 0 : i32
    return %2, %c0_i32_0 : i32, i32
  }
  func.func @transform_2(%arg0: i32, %arg1: i32) -> (i32, i32) {
    %c0_i32 = arith.constant 0 : i32
    %c0_i32_0 = arith.constant 0 : i32
    return %arg0, %c0_i32 : i32, i32
  }
}

</mosaic_0001>

<bundles_post_ra>
// kernel: tpu_custom_call.1
= control target key start
LH: loop header
LB: loop body
LE: loop exit
PB: predicated region body
PF: predicated region fallthrough
CT: control target
= control target key end

     0   :  { %7 = vsyncpa [#allocation4], 0  ;;  %s213_s0 = inlined_call_operand.hbm [shape: f32[16,128], index: 0, kind: input, shape index: {}]   ;;  %s214_s1 = inlined_call_operand.hbm [shape: f32[16,128], index: 1, kind: input, shape index: {}]   ;;  %s215_s2 = inlined_call_operand.hbm [shape: f32[1,1], index: 2, kind: output, shape index: {}]  }
   0x1   :  { %8 = vsyncpa [#allocation7], 0 }
   0x2   :  { %9 = vsyncpa [#allocation5], 0  ;;  %s184_s9 = smov [#allocation3]  }
   0x3   :  { %s21_s10 = sshll.u32 %s184_s9, 4  ;;  %s22_s10 = int_to_ptr.vmem [resolvable:$true] %s21_s10 }
   0x4   :  { %s138_s11 = scalar_lea.vmem %s22_s10, 256  ;;  %p143_p1 = scmp.lt.s32.totalorder %s22_s10, %s22_s10 }
   0x5   :  { %p139_p0 = scmp.ne.s32.totalorder %s22_s10, %s138_s11  ;;  %p144_p2 = scmp.lt.s32.totalorder %s138_s11, %s138_s11 }
   0x7   :  { %p145_p3 = por %p144_p2, %p143_p1 }
   0x9   :  { %p146_p4 = pnand %p145_p3, %p139_p0 }
   0xb   :  { %149 = shalt.err (!%p146_p4)
}
   0xc   :  { %s185_s12 = smov 128   ;;  %s186_s13 = smov 8  }
   0xd   :  { %27 = dma.hbm_to_vmem [thread:$0]  %s213_s0, 256, %s22_s10, [#allocation4], %s185_s12, %s185_s12, %s186_s13  }
   0xe   :  { %s187_s16 = smov [#allocation6]  }
   0xf   :  { %s39_s17 = sshll.u32 %s187_s16, 4  ;;  %s40_s17 = int_to_ptr.vmem [resolvable:$true] %s39_s17 }
  0x10   :  { %s158_s18 = scalar_lea.vmem %s40_s17, 256  ;;  %p163_p6 = scmp.lt.s32.totalorder %s40_s17, %s40_s17 }
  0x11   :  { %p159_p5 = scmp.ne.s32.totalorder %s40_s17, %s158_s18  ;;  %p164_p7 = scmp.lt.s32.totalorder %s158_s18, %s158_s18 }
  0x13   :  { %p165_p8 = por %p164_p7, %p163_p6 }
  0x15   :  { %p166_p9 = pnand %p165_p8, %p159_p5 }
  0x17   :  { %169 = shalt.err (!%p166_p9)
}
  0x18   :  { %45 = dma.hbm_to_vmem [thread:$0]  %s214_s1, 256, %s40_s17, [#allocation7], %s185_s12, %s185_s12, %s186_s13  }
  0x19   :  { %178 = dma.done.wait [#allocation4], 256  }
  0x1a   :  { %179 = vsyncadd [#allocation4], 4294967040 }
  0x1b   :  { %180 = dma.done.wait [#allocation7], 256  }
  0x1c   :  { %181 = vsyncadd [#allocation7], 4294967040  ;;  %v71_v0 = vld [vmem:[#allocation3] sm:$0xff]  ;;  %v72_v1 = vld [vmem:[#allocation3 + $0x8] sm:$0xff]  ;;  %s188_s1 = smov [#allocation8]  }
  0x1d   :  { %v73_v2 = vld [vmem:[#allocation6] sm:$0xff]  ;;  %v74_v3 = vld [vmem:[#allocation6 + $0x8] sm:$0xff] }
  0x1e   :  { %v75_v4 = vsub.f32 %v71_v0, %v73_v2  ;;  %v76_v5 = vsub.f32 %v72_v1, %v74_v3 }
  0x20   :  { %v77_v6 = vand.u32 2147483647, %v75_v4  ;;  %v78_v7 = vand.u32 2147483647, %v76_v5 }
  0x22   :  { %v92_v8 = vadd.f32 %v78_v7, %v77_v6 }
  0x24   :  { %93 = vadd.xlane.f32.xlu0 %v92_v8 }
  0xad   :  { %v94_v9 = vpop.xlane.xlu0 %93 }
  0xae   :  { %v95_v10 = vrot.slane %v94_v9, 4 }
  0xb0   :  { %v96_v11 = vadd.f32 %v95_v10, %v94_v9 }
  0xb2   :  { %v97_v12 = vrot.slane %v96_v11, 2 }
  0xb4   :  { %v98_v13 = vadd.f32 %v97_v12, %v96_v11 }
  0xb6   :  { %v99_v14 = vrot.slane %v98_v13, 1 }
  0xb8   :  { %v100_v15 = vadd.f32 %v99_v14, %v98_v13 }
  0xba   :  { %123 = vpush %v100_v15 }
  0xeb   :  { %s124_s0 = spop %123 }
  0xec   :  { %103 = sst [smem:[#allocation8]] %s124_s0 }
  0xed   :  { %111 = dma.smem_to_hbm %s188_s1, 16, %s215_s2, [#allocation5]  }
  0xee   :  { %182 = dma.done.wait [#allocation5], 16  }
  0xef   :  { %183 = vsyncadd [#allocation5], 4294967280 }
  0xf0   :  { %115 = sfence }
  0xf1   :  { %116 = vsyncpa [#allocation4], 1 }
  0xf2   :  { %117 = vsyncpa [#allocation7], 1 }
  0xf3   :  { %118 = vsyncpa [#allocation5], 1 }

</bundles_post_ra>
